<compile_context>
chip_gen: v5e
topology: v5e:2x2
jax: 0.10.0
libtpu: 0.0.40
codegen_flags: <defaults>
</compile_context>

<pallas_src>
import math

import jax
import jax.numpy as jnp
from jax.experimental import pallas as pl
from jax.experimental.pallas import tpu as pltpu

EPS = 1e-5  # F.layer_norm default
_SQRT_2_OVER_PI = 0.7978845608028654


def _round_up(x, m):
    return ((x + m - 1) // m) * m


def _cdiv(a, b):
    return -(-a // b)


def _state_policy_kernel(x_ref, gamma_ref, beta_ref, w1_ref, b1_ref,
                         w2_ref, b2_ref, o_ref):
    # ---- LayerNorm over last dim: f32 stats, two-pass variance ----
    x = x_ref[...].astype(jnp.float32)                       # (rt, dim)
    mean = jnp.mean(x, axis=-1, keepdims=True)
    xc = x - mean
    var = jnp.mean(xc * xc, axis=-1, keepdims=True)
    inv = jax.lax.rsqrt(var + EPS)
    y = xc * inv
    y = y * gamma_ref[...].astype(jnp.float32) + beta_ref[...].astype(jnp.float32)

    # ---- Linear 1 (dim -> inner): bf16 MXU operands, f32 accumulation ----
    h = jnp.dot(y.astype(jnp.bfloat16), w1_ref[...],
                preferred_element_type=jnp.float32)
    h = h + b1_ref[...].astype(jnp.float32)

    # ---- GELU (f32 polynomial), then bf16 intermediate for the second MXU pass ----
    # TODO(synk): torch.nn.GELU() default is exact erf-GELU; tanh approximation
    # is used for guaranteed Mosaic lowering (reference below matches it).
    h = 0.5 * h * (1.0 + jnp.tanh(_SQRT_2_OVER_PI * (h + 0.044715 * h * h * h)))
    # TODO(synk): nn.Dropout layers are eval-mode identities (no RNG dropout here).
    h = h.astype(jnp.bfloat16)

    # ---- Linear 2 (inner -> dim): bf16 MXU operands, f32 accumulation ----
    out = jnp.dot(h, w2_ref[...], preferred_element_type=jnp.float32)
    out = out + b2_ref[...].astype(jnp.float32)
    o_ref[...] = out.astype(o_ref.dtype)


def _vmem_config():
    """Generation-aware VMEM limit / tiling budget."""
    try:
        info = pltpu.get_tpu_info()
        vmem_cap = int(getattr(info, "vmem_capacity_bytes", 64 * 1024 * 1024))
    except Exception:
        vmem_cap = 64 * 1024 * 1024          # v7x-safe fallback (64 MiB / TC)
    vmem_limit = min(int(vmem_cap * 0.75), 96 * 1024 * 1024)   # ~48 MiB v7x, ~96 MiB v5e/v6e
    vmem_budget = int(vmem_limit * 0.85)                        # headroom for compiler scratch
    return vmem_limit, vmem_budget


def state_policy_forward(x, gamma, beta, w1, b1, w2, b2, *, rows_tile=None):
    """StatePolicy forward: LayerNorm(x) -> Linear -> GELU -> Linear.

    gamma/beta: (dim,).  w1: (dim, inner), b1: (inner,), w2: (inner, dim),
    b2: (dim,)  (weights stored as (in, out), i.e. already transposed vs torch).
    """
    orig_shape = x.shape
    dim = orig_shape[-1]
    inner = w1.shape[-1]
    rows = math.prod(orig_shape[:-1]) if len(orig_shape) > 1 else 1

    x2 = x.reshape(rows, dim)
    itemsize = x2.dtype.itemsize
    # sublane alignment: 8 rows for f32, 16 for bf16, 32 for int8
    sub = max(8, 32 // itemsize)

    # Weights are consumed by the MXU in bf16; biases / LN params stay f32.
    w1_bf = w1.astype(jnp.bfloat16)
    w2_bf = w2.astype(jnp.bfloat16)
    gamma2 = gamma.reshape(1, dim).astype(jnp.float32)
    beta2 = beta.reshape(1, dim).astype(jnp.float32)
    b1_2 = b1.reshape(1, inner).astype(jnp.float32)
    b2_2 = b2.reshape(1, dim).astype(jnp.float32)

    params = (gamma2, beta2, w1_bf, b1_2, w2_bf, b2_2)
    param_bytes = sum(int(p.size) * p.dtype.itemsize for p in params)

    vmem_limit, vmem_budget = _vmem_config()

    if rows_tile is None:
        avail = vmem_budget - param_bytes     # weights are single-buffered (Buffered(1))
        if avail <= 0:
            # TODO(synk): K/N-tiled weight streaming for very large dim/inner.
            raise ValueError(
                f"StatePolicy weights ({param_bytes} B) exceed the VMEM tiling "
                f"budget ({vmem_budget} B); weight streaming is not implemented.")
        rows_tile = 128                       # floor: never degrade to 8-row slabs
        for cand in (2048, 1024, 512, 256, 128):
            if cand % sub != 0:
                continue
            needed = 2 * cand * dim * itemsize          # x slab, double-buffered
            needed += 2 * cand * dim * itemsize         # out slab, double-buffered
            needed += cand * (3 * dim * 4 + inner * 6)  # f32 LN temps + f32/bf16 GELU intermediate
            if needed <= avail:
                rows_tile = cand
                break
    rows_tile = max(sub, _round_up(rows_tile, sub))

    # Never exceed the (sub-aligned) row count, and keep >=2 grid steps when
    # possible so both v7x TensorCores get work under "parallel" semantics.
    rows_tile = min(rows_tile, _round_up(rows, sub))
    if rows >= 2 * sub:
        rows_tile = min(rows_tile, _round_up(_cdiv(rows, 2), sub))

    grid = (max(1, _cdiv(rows, rows_tile)),)

    cost = pl.CostEstimate(
        flops=int(4 * rows * dim * inner + 10 * rows * (dim + inner)),
        transcendentals=int(rows * (inner + 1)),        # tanh per hidden elem + rsqrt per row
        bytes_accessed=int(2 * rows * dim * itemsize + param_bytes),
    )

    resident = lambda i: (0, 0)

    out = pl.pallas_call(
        _state_policy_kernel,
        out_shape=jax.ShapeDtypeStruct((rows, dim), x.dtype),
        grid_spec=pltpu.PrefetchScalarGridSpec(
            num_scalar_prefetch=0,
            grid=grid,
            in_specs=[
                pl.BlockSpec((rows_tile, dim), lambda i: (i, 0)),      # x slab (pipelined)
                pl.BlockSpec((1, dim), resident, pipeline_mode=pl.Buffered(1)),      # gamma
                pl.BlockSpec((1, dim), resident, pipeline_mode=pl.Buffered(1)),      # beta
                pl.BlockSpec((dim, inner), resident, pipeline_mode=pl.Buffered(1)),  # w1 (bf16)
                pl.BlockSpec((1, inner), resident, pipeline_mode=pl.Buffered(1)),    # b1
                pl.BlockSpec((inner, dim), resident, pipeline_mode=pl.Buffered(1)),  # w2 (bf16)
                pl.BlockSpec((1, dim), resident, pipeline_mode=pl.Buffered(1)),      # b2
            ],
            out_specs=pl.BlockSpec((rows_tile, dim), lambda i: (i, 0)),
        ),
        compiler_params=pltpu.CompilerParams(
            dimension_semantics=("parallel",),
            vmem_limit_bytes=vmem_limit,
        ),
        cost_estimate=cost,
    )(x2, gamma2, beta2, w1_bf, b1_2, w2_bf, b2_2)

    return out.reshape(orig_shape)


if __name__ == "__main__":
    key = jax.random.PRNGKey(0)
    batch, seq, dim, mult = 2, 8, 128, 2       # lane-dense dim (multiple of 128)
    inner = dim * mult

    k = jax.random.split(key, 5)
    x = jax.random.normal(k[0], (batch, seq, dim), dtype=jnp.float32)

    # LayerNorm params: gamma = ones (nn.Parameter), beta = zeros (buffer)
    gamma = jnp.ones((dim,), jnp.float32)
    beta = jnp.zeros((dim,), jnp.float32)

    # Linear params (deterministic), stored as (in, out)
    w1 = jax.random.normal(k[1], (dim, inner), jnp.float32) / jnp.sqrt(dim)
    b1 = jax.random.normal(k[2], (inner,), jnp.float32) * 0.01
    w2 = jax.random.normal(k[3], (inner, dim), jnp.float32) / jnp.sqrt(inner)
    b2 = jax.random.normal(k[4], (dim,), jnp.float32) * 0.01

    y = state_policy_forward(x, gamma, beta, w1, b1, w2, b2)
    y = jax.block_until_ready(y)

    # Pure-JAX reference using the same numerics as the kernel
    # (f32 LayerNorm stats, bf16 MXU operands with f32 accumulation, tanh GELU).
    mean = jnp.mean(x, axis=-1, keepdims=True)
    xc = x - mean
    var = jnp.mean(xc * xc, axis=-1, keepdims=True)
    n = xc / jnp.sqrt(var + EPS) * gamma + beta
    h = jnp.dot(n.astype(jnp.bfloat16), w1.astype(jnp.bfloat16),
                preferred_element_type=jnp.float32) + b1
    h = 0.5 * h * (1.0 + jnp.tanh(_SQRT_2_OVER_PI * (h + 0.044715 * h ** 3)))
    ref = jnp.dot(h.astype(jnp.bfloat16), w2.astype(jnp.bfloat16),
                  preferred_element_type=jnp.float32) + b2

    assert y.shape == x.shape
    err = float(jnp.max(jnp.abs(y - ref)))
    assert jnp.allclose(y, ref, atol=2e-2, rtol=2e-2), \
        f"mismatch vs reference, max abs err={err}"

    print("KERNEL_OK")
</pallas_src>

<mosaic_0001>
module attributes {stable_mosaic.version = 11 : i64} {
  func.func @_state_policy_kernel(%arg0: i32, %arg1: memref<8x128xf32, #tpu.memory_space<vmem>>, %arg2: memref<1x128xf32, #tpu.memory_space<vmem>>, %arg3: memref<1x128xf32, #tpu.memory_space<vmem>>, %arg4: memref<128x256xbf16, #tpu.memory_space<vmem>>, %arg5: memref<1x256xf32, #tpu.memory_space<vmem>>, %arg6: memref<256x128xbf16, #tpu.memory_space<vmem>>, %arg7: memref<1x128xf32, #tpu.memory_space<vmem>>, %arg8: memref<8x128xf32, #tpu.memory_space<vmem>>) attributes {dimension_semantics = [#tpu.dimension_semantics<parallel>], iteration_bounds = array<i64: 2>, scalar_prefetch = 0 : i64, scratch_operands = 0 : i64, tpu.core_type = #tpu.core_type<tc>, window_params = [{transform_indices = @transform_0, window_bounds = array<i64: 8, 128>}, {pipeline_mode = #tpu.pipeline_mode<synchronous>, transform_indices = @transform_1, window_bounds = array<i64: 1, 128>}, {pipeline_mode = #tpu.pipeline_mode<synchronous>, transform_indices = @transform_2, window_bounds = array<i64: 1, 128>}, {pipeline_mode = #tpu.pipeline_mode<synchronous>, transform_indices = @transform_3, window_bounds = array<i64: 128, 256>}, {pipeline_mode = #tpu.pipeline_mode<synchronous>, transform_indices = @transform_4, window_bounds = array<i64: 1, 256>}, {pipeline_mode = #tpu.pipeline_mode<synchronous>, transform_indices = @transform_5, window_bounds = array<i64: 256, 128>}, {pipeline_mode = #tpu.pipeline_mode<synchronous>, transform_indices = @transform_6, window_bounds = array<i64: 1, 128>}, {transform_indices = @transform_7, window_bounds = array<i64: 8, 128>}]} {
    %c0 = arith.constant 0 : index
    %c0_0 = arith.constant 0 : index
    %0 = vector.load %arg1[%c0, %c0_0] : memref<8x128xf32, #tpu.memory_space<vmem>>, vector<8x128xf32>
    %cst = arith.constant dense<0.000000e+00> : vector<8xf32>
    %1 = vector.multi_reduction <add>, %0, %cst [1] : vector<8x128xf32> to vector<8xf32>
    %2 = vector.shape_cast %1 : vector<8xf32> to vector<8x1xf32>
    %cst_1 = arith.constant 1.280000e+02 : f32
    %3 = vector.broadcast %cst_1 : f32 to vector<8x1xf32>
    %4 = arith.divf %2, %3 : vector<8x1xf32>
    %5 = vector.broadcast %4 : vector<8x1xf32> to vector<8x128xf32>
    %6 = arith.subf %0, %5 : vector<8x128xf32>
    %7 = arith.mulf %6, %6 : vector<8x128xf32>
    %cst_2 = arith.constant dense<0.000000e+00> : vector<8xf32>
    %8 = vector.multi_reduction <add>, %7, %cst_2 [1] : vector<8x128xf32> to vector<8xf32>
    %9 = vector.shape_cast %8 : vector<8xf32> to vector<8x1xf32>
    %cst_3 = arith.constant 1.280000e+02 : f32
    %10 = vector.broadcast %cst_3 : f32 to vector<8x1xf32>
    %11 = arith.divf %9, %10 : vector<8x1xf32>
    %cst_4 = arith.constant 9.99999974E-6 : f32
    %12 = vector.broadcast %cst_4 : f32 to vector<8x1xf32>
    %13 = arith.addf %11, %12 : vector<8x1xf32>
    %14 = math.rsqrt %13 : vector<8x1xf32>
    %15 = vector.broadcast %14 : vector<8x1xf32> to vector<8x128xf32>
    %16 = arith.mulf %6, %15 : vector<8x128xf32>
    %c0_5 = arith.constant 0 : index
    %c0_6 = arith.constant 0 : index
    %17 = vector.load %arg2[%c0_5, %c0_6] : memref<1x128xf32, #tpu.memory_space<vmem>>, vector<1x128xf32>
    %18 = vector.broadcast %17 : vector<1x128xf32> to vector<8x128xf32>
    %19 = arith.mulf %16, %18 : vector<8x128xf32>
    %c0_7 = arith.constant 0 : index
    %c0_8 = arith.constant 0 : index
    %20 = vector.load %arg3[%c0_7, %c0_8] : memref<1x128xf32, #tpu.memory_space<vmem>>, vector<1x128xf32>
    %21 = vector.broadcast %20 : vector<1x128xf32> to vector<8x128xf32>
    %22 = arith.addf %19, %21 : vector<8x128xf32>
    %23 = arith.truncf %22 : vector<8x128xf32> to vector<8x128xbf16>
    %c0_9 = arith.constant 0 : index
    %c0_10 = arith.constant 0 : index
    %24 = vector.load %arg4[%c0_9, %c0_10] : memref<128x256xbf16, #tpu.memory_space<vmem>>, vector<128x256xbf16>
    %cst_11 = arith.constant dense<0.000000e+00> : vector<8x256xf32>
    %25 = tpu.matmul %23, %24, %cst_11 {dimension_numbers = #tpu.dot_dimension_numbers<[1], [0], [0], [1], [0, 0, 1, 1], [], []>} : vector<8x128xbf16>, vector<128x256xbf16>, vector<8x256xf32> -> vector<8x256xf32>
    %c0_12 = arith.constant 0 : index
    %c0_13 = arith.constant 0 : index
    %26 = vector.load %arg5[%c0_12, %c0_13] : memref<1x256xf32, #tpu.memory_space<vmem>>, vector<1x256xf32>
    %27 = vector.broadcast %26 : vector<1x256xf32> to vector<8x256xf32>
    %28 = arith.addf %25, %27 : vector<8x256xf32>
    %cst_14 = arith.constant 5.000000e-01 : f32
    %29 = vector.broadcast %cst_14 : f32 to vector<8x256xf32>
    %30 = arith.mulf %29, %28 : vector<8x256xf32>
    %cst_15 = arith.constant 4.471500e-02 : f32
    %31 = vector.broadcast %cst_15 : f32 to vector<8x256xf32>
    %32 = arith.mulf %31, %28 : vector<8x256xf32>
    %33 = arith.mulf %32, %28 : vector<8x256xf32>
    %34 = arith.mulf %33, %28 : vector<8x256xf32>
    %35 = arith.addf %28, %34 : vector<8x256xf32>
    %cst_16 = arith.constant 0.797884583 : f32
    %36 = vector.broadcast %cst_16 : f32 to vector<8x256xf32>
    %37 = arith.mulf %36, %35 : vector<8x256xf32>
    %38 = math.tanh %37 : vector<8x256xf32>
    %cst_17 = arith.constant 1.000000e+00 : f32
    %39 = vector.broadcast %cst_17 : f32 to vector<8x256xf32>
    %40 = arith.addf %39, %38 : vector<8x256xf32>
    %41 = arith.mulf %30, %40 : vector<8x256xf32>
    %42 = arith.truncf %41 : vector<8x256xf32> to vector<8x256xbf16>
    %c0_18 = arith.constant 0 : index
    %c0_19 = arith.constant 0 : index
    %43 = vector.load %arg6[%c0_18, %c0_19] : memref<256x128xbf16, #tpu.memory_space<vmem>>, vector<256x128xbf16>
    %cst_20 = arith.constant dense<0.000000e+00> : vector<8x128xf32>
    %44 = tpu.matmul %42, %43, %cst_20 {dimension_numbers = #tpu.dot_dimension_numbers<[1], [0], [0], [1], [0, 0, 1, 1], [], []>} : vector<8x256xbf16>, vector<256x128xbf16>, vector<8x128xf32> -> vector<8x128xf32>
    %c0_21 = arith.constant 0 : index
    %c0_22 = arith.constant 0 : index
    %45 = vector.load %arg7[%c0_21, %c0_22] : memref<1x128xf32, #tpu.memory_space<vmem>>, vector<1x128xf32>
    %46 = vector.broadcast %45 : vector<1x128xf32> to vector<8x128xf32>
    %47 = arith.addf %44, %46 : vector<8x128xf32>
    %c0_23 = arith.constant 0 : index
    %c0_24 = arith.constant 0 : index
    %48 = vector.load %arg8[%c0_23, %c0_24] : memref<8x128xf32, #tpu.memory_space<vmem>>, vector<8x128xf32>
    tpu.vector_store %arg8[%c0_23, %c0_24], %47 {strides = array<i32>} : memref<8x128xf32, #tpu.memory_space<vmem>>, vector<8x128xf32>,
    return
  }
  func.func @transform_0(%arg0: i32) -> (i32, i32) {
    %c0_i32 = arith.constant 0 : i32
    %c0_i32_0 = arith.constant 0 : i32
    return %arg0, %c0_i32 : i32, i32
  }
  func.func @transform_1(%arg0: i32) -> (i32, i32) {
    %c0_i32 = arith.constant 0 : i32
    %c0_i32_0 = arith.constant 0 : i32
    %c0_i32_1 = arith.constant 0 : i32
    return %c0_i32, %c0_i32_0 : i32, i32
  }
  func.func @transform_2(%arg0: i32) -> (i32, i32) {
    %c0_i32 = arith.constant 0 : i32
    %c0_i32_0 = arith.constant 0 : i32
    %c0_i32_1 = arith.constant 0 : i32
    return %c0_i32, %c0_i32_0 : i32, i32
  }
  func.func @transform_3(%arg0: i32) -> (i32, i32) {
    %c0_i32 = arith.constant 0 : i32
    %c0_i32_0 = arith.constant 0 : i32
    %c0_i32_1 = arith.constant 0 : i32
    return %c0_i32, %c0_i32_0 : i32, i32
  }
  func.func @transform_4(%arg0: i32) -> (i32, i32) {
    %c0_i32 = arith.constant 0 : i32
    %c0_i32_0 = arith.constant 0 : i32
    %c0_i32_1 = arith.constant 0 : i32
    return %c0_i32, %c0_i32_0 : i32, i32
  }
  func.func @transform_5(%arg0: i32) -> (i32, i32) {
    %c0_i32 = arith.constant 0 : i32
    %c0_i32_0 = arith.constant 0 : i32
    %c0_i32_1 = arith.constant 0 : i32
    return %c0_i32, %c0_i32_0 : i32, i32
  }
  func.func @transform_6(%arg0: i32) -> (i32, i32) {
    %c0_i32 = arith.constant 0 : i32
    %c0_i32_0 = arith.constant 0 : i32
    %c0_i32_1 = arith.constant 0 : i32
    return %c0_i32, %c0_i32_0 : i32, i32
  }
  func.func @transform_7(%arg0: i32) -> (i32, i32) {
    %c0_i32 = arith.constant 0 : i32
    %c0_i32_0 = arith.constant 0 : i32
    return %arg0, %c0_i32 : i32, i32
  }
}

</mosaic_0001>

<bundles_post_ra>
// kernel: tpu_custom_call.1
= control target key start
LH: loop header
LB: loop body
LE: loop exit
PB: predicated region body
PF: predicated region fallthrough
CT: control target
= control target key end

     0   :  { %s1500_s0 = inlined_call_operand.hbm [shape: f32[16,128], index: 0, kind: input, shape index: {}]   ;;  %s1501_s1 = inlined_call_operand.hbm [shape: f32[1,128], index: 1, kind: input, shape index: {}]   ;;  %s1502_s2 = inlined_call_operand.vmem [shape: f32[1,128], index: 2, kind: input, shape index: {}]   ;;  %s1503_s3 = inlined_call_operand.hbm [shape: bf16[128,256], index: 3, kind: input, shape index: {}]   ;;  %s1504_s4 = inlined_call_operand.vmem [shape: f32[1,256], index: 4, kind: input, shape index: {}]   ;;  %s1505_s5 = inlined_call_operand.hbm [shape: bf16[256,128], index: 5, kind: input, shape index: {}]   ;;  %s1506_s6 = inlined_call_operand.vmem [shape: f32[1,128], index: 6, kind: input, shape index: {}]   ;;  %s1507_s7 = inlined_call_operand.hbm [shape: f32[16,128], index: 7, kind: output, shape index: {}]  }
   0x1   :  { %1508 = sst [smem:[#allocation15_spill]] %s1501_s1 }
   0x2   :  { %12 = vsyncpa [#allocation3], 0 }
   0x3   :  { %14 = vsyncpa [#allocation3 + $0x1], 0 }
   0x4   :  { %15 = vsyncpa [#allocation6], 0 }
   0x5   :  { %16 = vsyncpa [#allocation9], 0 }
   0x6   :  { %17 = vsyncpa [#allocation4], 0 }
   0x7   :  { %19 = vsyncpa [#allocation4 + $0x1], 0  ;;  %s1320_s24 = smov 0   ;;  %s1322_s25 = smov 0  }
   0x8   :  { %s1324_s26 = smov 0   ;;  %s1326_s27 = smov 0  }
   0x9 LB: > { %s1341_s28 = sadd.s32 4294967295, %s1270_s27   ;;  %s805_s29 = sadd.s32 4294967294, %s1270_s27   ;;  %s1270_s27 = sphi %s1326_s27, %s1520_s27   ;;  %s1266_s26 = sphi %s1324_s26, %s1519_s26   ;;  %s1262_s25 = sphi %s1322_s25, %s1518_s25   ;;  %s1258_s24 = sphi %s1320_s24, %s1517_s24  }
   0xa   : > { %p45_p0 = scmp.ne.s32.totalorder %s1262_s25, %s1258_s24  ;;  %p46_p1 = scmp.eq.s32.totalorder %s1341_s28, 0 }
   0xb   : > { %p195_p2 = scmp.eq.s32.totalorder %s1341_s28, 1  ;;  %p201_p3 = scmp.eq.s32.totalorder %s805_s29, 1 }
   0xc   : > { %p1350_p4 = por %p46_p1, %p45_p0  ;;  %p806_p5 = scmp.ge.s32.totalorder %s1270_s27, 1 }
   0xd   : > { %p1355_p6 = por %p201_p3, %p45_p0  ;;  %p208_p7 = scmp.lt.s32.totalorder %s1270_s27, 3 }
   0xe   : > { %s1511_s1 = sld [smem:[#allocation15_spill]]  ;;  %s1272_s13 = smov [#allocation5]  }
   0xf   : > { %p1363_p8 = pnand %p806_p5, %p208_p7  ;;  %s222_s14 = sshll.u32 %s1272_s13, 4  ;;  %s223_s14 = int_to_ptr.vmem [resolvable:$true] %s222_s14 }
  0x10   : > { %s234_s17 = sshll.u32 %s1503_s3, 4  ;;  %s1273_s19 = smov [#allocation7]   ;;  %s235_s17 = int_to_ptr.hbm [resolvable:$true] %s234_s17 }
  0x11   : > { %p999_p10 = pneg %p1363_p8  ;;  %s236_s20 = sshll.u32 %s1273_s19, 4  ;;  %s237_s20 = int_to_ptr.vmem [resolvable:$true] %s236_s20 }
  0x12   : > { %s1274_s21 = smov 128   ;;  %s1275_s22 = smov 8  }
  0x13   : > { %p1375_p11 = pnand %p999_p10, %p46_p1  ;;  %s251_s9 = sshll.u32 %s1505_s5, 4  ;;  %s252_s9 = int_to_ptr.hbm [resolvable:$true] %s251_s9 }
  0x14   : > { %s220_s11 = sshll.u32 %s1511_s1, 4  ;;  %s1276_s10 = smov [#allocation8]   ;;  %s221_s11 = int_to_ptr.hbm [resolvable:$true] %s220_s11 }
  0x15   : > { %1002 = dma.hbm_to_vmem [thread:$0]  (!%p1375_p11), %s221_s11, 16, %s223_s14, [#allocation6]  }
  0x16   : > { %1005 = dma.hbm_to_vmem [thread:$0]  (!%p1375_p11), %s235_s17, 2048, %s237_s20, [#allocation6], %s1274_s21, %s1274_s21, %s1275_s22  }
  0x17   : > { %s253_s11 = sshll.u32 %s1276_s10, 4  ;;  %s1277_s13 = smov 64   ;;  %s254_s11 = int_to_ptr.vmem [resolvable:$true] %s253_s11 }
  0x18   : > { %s1278_s14 = smov 4   ;;  %s1389_s15 = sadd.s32 1, %s1270_s27  }
  0x19   : > { %1008 = dma.hbm_to_vmem [thread:$0]  (!%p1375_p11), %s252_s9, 2048, %s254_s11, [#allocation9], %s1277_s13, %s1277_s13, %s1278_s14  }
  0x1a   : > { %s29_s16 = ssub.s32 %s1270_s27, %s1389_s15  ;;  %s32_s17 = sadd.s32 1, %s1266_s26 }
  0x1b   : > { %p30_p12 = scmp.eq.s32.totalorder %s29_s16, 0  ;;  %p39_p13 = scmp.ne.s32.totalorder %s1266_s26, %s1262_s25 }
  0x1c   : > { %p40_p0 = scmp.eq.s32.totalorder %s1270_s27, 0  ;;  %p1020_p5 = scmp.lt.s32.totalorder %s1270_s27, 2 }
  0x1d   : > { %s1398_s19 = scalar_select %p30_p12, %s1266_s26, %s32_s17  }
  0x1e   : > { %p1402_p3 = por %p195_p2, %p39_p13  ;;  %s270_s21 = sand.u32 1, %s1266_s26  }
  0x1f   : > { %s812_s22 = sshll.u32 %s1270_s27, 3  ;;  %p41_p7 = por %p40_p0, %p39_p13 }
  0x20   : > { %s811_s18 = sshll.u32 %s270_s21, 3  ;;  %s278_s9 = scalar_lea.hbm %s1500_s0, %s812_s22 }
  0x21   : > { %s280_s10 = sshll.u32 %s278_s9, 4  ;;  %s274_s11 = scalar_lea.vmem [#allocation2], %s811_s18  ;;  %s281_s10 = int_to_ptr.hbm [resolvable:$true] %s280_s10 }
  0x22   : > { %s282_s13 = sshll.u32 %s274_s11, 4  ;;  %p1412_p10 = pnand %p1020_p5, %p41_p7  ;;  %s283_s13 = int_to_ptr.vmem [resolvable:$true] %s282_s13 }
  0x23   : > { %s271_s16 = scalar_lea.sflag [#allocation3], %s270_s21  ;;  %s1166_s17 = sshra.s32 %s281_s10, 4  ;;  %s1167_s17 = int_to_ptr.hbm [resolvable:$true] %s1166_s17 }
  0x24   : > { %s1168_s1 = scalar_lea.hbm %s1167_s17, 8  ;;  %p1170_p11 = pneg %p1412_p10 }
  0x25   : > { %p1169_p2 = scmp.ne.s32.totalorder %s1167_s17, %s1168_s1  ;;  %s1173_s18 = scalar_lea.hbm %s1500_s0, 16 }
  0x26   : > { %p1174_p0 = scmp.lt.s32.totalorder %s1167_s17, %s1500_s0  ;;  %p1175_p5 = scmp.lt.s32.totalorder %s1173_s18, %s1168_s1 }
  0x27   : > { %p1171_p12 = pnand %p1170_p11, %p1169_p2 }
  0x28   : > { %p1176_p7 = por %p1175_p5, %p1174_p0 }
  0x29   : > { %p1172_p13 = pneg %p1171_p12 }
  0x2b   : > { %p1177_p9 = pnand %p1176_p7, %p1172_p13 }
  0x2d   : > { %1180 = shalt.err (!%p1177_p9)
}
  0x2e   : > { %1012 = dma.hbm_to_vmem [thread:$0]  (!%p1412_p10), %s281_s10, 128, %s283_s13, %s271_s16  }
  0x2f   : > { %291 = sbr.rel (%p1363_p8) target bundleno = 618 (0x26a), region = 48  ;;  %s1429_s21 = sand.u32 (!%p1363_p8), 1, %s1262_s25  }
  0x30   : > { %s814_s11 = sshll.u32 (!%p1363_p8), %s1429_s21, 3  ;;  %s294_s22 = scalar_lea.sflag (!%p1363_p8), [#allocation3], %s1429_s21 }
  0x31   : > { %s297_s1 = scalar_lea.vmem (!%p1363_p8), [#allocation2], %s814_s11 }
  0x34   : > { %1241 = dma.done.wait (%p1350_p4), %s294_s22, 128  }
  0x35   : > { %1243 = vsyncadd (%p1350_p4), %s294_s22, 4294967168 }
  0x36   : > { %1245 = dma.done.wait (%p46_p1), [#allocation6], 2064  }
  0x37   : > { %1247 = vsyncadd (%p46_p1), [#allocation6], 4294965232 }
  0x38   : > { %1249 = dma.done.wait (%p46_p1), [#allocation9], 2048  }
  0x39   : > { %1251 = vsyncadd (%p46_p1), [#allocation9], 4294965248  ;;  %v344_v0 = vld [vmem:[%s297_s1] sm:$0xff]  ;;  %v1279_v1 = vmov 128.0   ;;  %v869_v18 = vld [vmem:[#allocation7 + $0x60] sm:$0xf] }
  0x3a   : > { %345 = vadd.xlane.f32.xlu0 %v344_v0  ;;  %1068 = vrcp.f32 %v1279_v1  ;;  %v877_v2 = vld [vmem:[#allocation7 + $0x70] sm:$0xf]  ;;  %v966_v3 = vld [vmem:[#allocation7 + $0x74] sm:$0xf0]  ;;  %v965_v4 = vld [vmem:[#allocation7 + $0x74] sm:$0xf] }
  0x3b   : > { %v878_v5 = vor.u32 %v966_v3, %v877_v2  ;;  %v879_v6 = vld [vmem:[#allocation7 + $0x78] sm:$0xf0]  ;;  %v964_v19 = vld [vmem:[#allocation7 + $0x64] sm:$0xf0]  ;;  %v963_v20 = vld [vmem:[#allocation7 + $0x64] sm:$0xf] }
  0x3c   : > { %v882_v7 = vor.u32 %v965_v4, %v879_v6  ;;  %v870_v21 = vor.u32 %v964_v19, %v869_v18  ;;  %v871_v22 = vld [vmem:[#allocation7 + $0x68] sm:$0xf0]  ;;  %v861_v24 = vld [vmem:[#allocation7 + $0x50] sm:$0xf]  ;;  %v962_v25 = vld [vmem:[#allocation7 + $0x54] sm:$0xf0] }
  0x3d   : > { %485 = vmatpush.bf16.msra.mxu0 %v878_v5  ;;  %v874_v23 = vor.u32 %v963_v20, %v871_v22  ;;  %v961_v26 = vld [vmem:[#allocation7 + $0x54] sm:$0xf]  ;;  %v862_v27 = vor.u32 %v962_v25, %v861_v24  ;;  %v863_v28 = vld [vmem:[#allocation7 + $0x58] sm:$0xf0]  ;;  %v853_v30 = vld [vmem:[#allocation7 + $0x40] sm:$0xf] }
  0x3e   : > { %498 = vmatpush.bf16.msra.mxu1 %v882_v7  ;;  %v866_v29 = vor.u32 %v961_v26, %v863_v28  ;;  %v960_v31 = vld [vmem:[#allocation7 + $0x44] sm:$0xf0]  ;;  %v959_v32 = vld [vmem:[#allocation7 + $0x44] sm:$0xf]  ;;  %v855_v34 = vld [vmem:[#allocation7 + $0x48] sm:$0xf0] }
  0x3f   : > { %v854_v33 = vor.u32 %v960_v31, %v853_v30  ;;  %v858_v35 = vor.u32 %v959_v32, %v855_v34  ;;  %v845_v36 = vld [vmem:[#allocation7 + $0x30] sm:$0xf]  ;;  %v958_v37 = vld [vmem:[#allocation7 + $0x34] sm:$0xf0]  ;;  %v957_v38 = vld [vmem:[#allocation7 + $0x34] sm:$0xf] }
  0x40   : > { %v1069_v8 = vpop.eup %1068  ;;  %v846_v39 = vor.u32 %v958_v37, %v845_v36  ;;  %v847_v40 = vld [vmem:[#allocation7 + $0x38] sm:$0xf0]  ;;  %v837_v42 = vld [vmem:[#allocation7 + $0x20] sm:$0xf]  ;;  %v956_v43 = vld [vmem:[#allocation7 + $0x24] sm:$0xf0] }
  0x41   : > { %v348_v9 = vmul.f32 128.0, %v1069_v8  ;;  %vm352_vm0 = vweird.f32 %v1069_v8  ;;  %486 = vmatpush.bf16.msra.mxu0 %v870_v21  ;;  %v850_v41 = vor.u32 %v957_v38, %v847_v40  ;;  %v955_v44 = vld [vmem:[#allocation7 + $0x24] sm:$0xf]  ;;  %v838_v45 = vor.u32 %v956_v43, %v837_v42  ;;  %v839_v46 = vld [vmem:[#allocation7 + $0x28] sm:$0xf0]  ;;  %v974_v60 = vld [vmem:[#allocation8 + $0x38] sm:$0xff] }
  0x42   : > { %499 = vmatpush.bf16.msra.mxu1 %v874_v23  ;;  %v842_v47 = vor.u32 %v955_v44, %v839_v46  ;;  %v829_v48 = vld [vmem:[#allocation7 + $0x10] sm:$0xf]  ;;  %v954_v49 = vld [vmem:[#allocation7 + $0x14] sm:$0xf0]  ;;  %v953_v50 = vld [vmem:[#allocation7 + $0x14] sm:$0xf]  ;;  %663 = vmatpush.bf16.msra.mxu2 %v974_v60 }
  0x43   : > { %v349_v10 = vsub.f32 1.0, %v348_v9  ;;  %v830_v51 = vor.u32 %v954_v49, %v829_v48  ;;  %v831_v52 = vld [vmem:[#allocation7 + $0x18] sm:$0xf0]  ;;  %v821_v53 = vld [vmem:[#allocation7] sm:$0xf]  ;;  %v981_v1 = vld [vmem:[#allocation8 + $0x70] sm:$0xff] }
  0x44   : > { %v952_v54 = vld [vmem:[#allocation7 + $0x4] sm:$0xf0]  ;;  %v834_v55 = vor.u32 %v953_v50, %v831_v52  ;;  %v951_v56 = vld [vmem:[#allocation7 + $0x4] sm:$0xf]  ;;  %v823_v57 = vld [vmem:[#allocation7 + $0x8] sm:$0xf0] }
  0x45   : > { %v350_v11 = vmul.f32 %v1069_v8, %v349_v10  ;;  %487 = vmatpush.bf16.msra.mxu0 %v862_v27  ;;  %v822_v58 = vor.u32 %v952_v54, %v821_v53  ;;  %v826_v59 = vor.u32 %v951_v56, %v823_v57  ;;  %v982_v61 = vld [vmem:[#allocation8 + $0x78] sm:$0xff]  ;;  %v980_v18 = vld [vmem:[#allocation8 + $0x68] sm:$0xff]  ;;  %v971_v19 = vld [vmem:[#allocation8 + $0x20] sm:$0xff]  ;;  %s948_s14 = sshll.u32 %s1341_s28, 3  ;;  %s343_s9 = scalar_lea.vmem [#allocation10], %s814_s11 }
  0x46   : > { %500 = vmatpush.bf16.msra.mxu1 %v866_v29  ;;  %676 = vmatpush.bf16.msra.mxu3 %v982_v61  ;;  %v1065_v9 = vld [vmem:[#allocation5] ss:$0 sm:$0xff]  ;;  %v979_v20 = vld [vmem:[#allocation8 + $0x60] sm:$0xff]  ;;  %v977_v23 = vld [vmem:[#allocation8 + $0x50] sm:$0xff]  ;;  %s701_s29 = scalar_lea.hbm %s1507_s7, %s948_s14  ;;  %s703_s22 = sshll.u32 %s343_s9, 4  ;;  %s704_s22 = int_to_ptr.vmem [resolvable:$true] %s703_s22 }
  0x47   : > { %v351_v12 = vadd.f32 %v1069_v8, %v350_v11  ;;  %v970_v21 = vld [vmem:[#allocation8 + $0x18] sm:$0xff]  ;;  %v968_v24 = vld [vmem:[#allocation8 + $0x8] sm:$0xff]  ;;  %v967_v26 = vld [vmem:[#allocation8] sm:$0xff]  ;;  %s705_s1 = sshll.u32 %s701_s29, 4  ;;  %s691_s28 = scalar_lea.sflag [#allocation4], %s1429_s21  ;;  %s706_s1 = int_to_ptr.hbm [resolvable:$true] %s705_s1 }
  0x48   : > { %v978_v22 = vld [vmem:[#allocation8 + $0x58] sm:$0xff]  ;;  %v976_v25 = vld [vmem:[#allocation8 + $0x48] sm:$0xff]  ;;  %v975_v27 = vld [vmem:[#allocation8 + $0x40] sm:$0xff]  ;;  %s1210_s30 = sshra.s32 %s706_s1, 4  ;;  %s1216_s11 = scalar_lea.hbm %s1507_s7, 16  ;;  %s1211_s30 = int_to_ptr.hbm [resolvable:$true] %s1210_s30 }
  0x49   : > { %v1447_v13 = vsel %vm352_vm0, %v1069_v8, %v351_v12  ;;  %488 = vmatpush.bf16.msra.mxu0 %v854_v33  ;;  %v1066_v12 = vld [vmem:[%s1502_s2] ss:$0 sm:$0xff]  ;;  %s1212_s12 = scalar_lea.hbm %s1211_s30, 8  ;;  %p1217_p9 = scmp.lt.s32.totalorder %s1211_s30, %s1507_s7 }
  0x4a   : > { %501 = vmatpush.bf16.msra.mxu1 %v858_v35  ;;  %677 = vmatpush.bf16.msra.mxu3 %v981_v1  ;;  %v399_v28 = vld [vmem:[%s1504_s4] sm:$0x3]  ;;  %p1213_p1 = scmp.ne.s32.totalorder %s1211_s30, %s1212_s12  ;;  %p1218_p10 = scmp.lt.s32.totalorder %s1216_s11, %s1212_s12 }
  0x4b   : > { %v401_v29 = vperm.slane %v399_v28, 0  ;;  %v402_v30 = vperm.slane %v399_v28, 1  ;;  %v1067_v57 = vld [vmem:[%s1506_s6] ss:$0 sm:$0xff] }
  0x4c   : > { %p1214_p4 = pnand %p1213_p1, %p1402_p3  ;;  %p1219_p2 = por %p1218_p10, %p1217_p9 }
  0x4d   : > { %489 = vmatpush.bf16.msra.mxu0 %v846_v39 }
  0x4e   : > { %502 = vmatpush.bf16.msra.mxu1 %v850_v41  ;;  %678 = vmatpush.bf16.msra.mxu3 %v980_v18  ;;  %p1215_p8 = pneg %p1214_p4 }
  0x50   : > { %p1220_p11 = pnand %p1219_p2, %p1215_p8 }
  0x51   : > { %490 = vmatpush.bf16.msra.mxu0 %v838_v45 }
  0x52   : > { %503 = vmatpush.bf16.msra.mxu1 %v842_v47  ;;  %679 = vmatpush.bf16.msra.mxu3 %v979_v20 }
  0x55   : > { %491 = vmatpush.bf16.msra.mxu0 %v830_v51 }
  0x56   : > { %504 = vmatpush.bf16.msra.mxu1 %v834_v55  ;;  %680 = vmatpush.bf16.msra.mxu3 %v978_v22 }
  0x59   : > { %492 = vmatpush.bf16.msra.mxu0 %v822_v58 }
  0x5a   : > { %505 = vmatpush.bf16.msra.mxu1 %v826_v59  ;;  %681 = vmatpush.bf16.msra.mxu3 %v977_v23 }
  0x5e   : > { %682 = vmatpush.bf16.msra.mxu3 %v976_v25 }
  0x62   : > { %683 = vmatpush.bf16.msra.mxu3 %v975_v27 }
  0xad   : > { %v346_v14 = vpop.xlane.xlu0 %345 }
  0xae   : > { %v354_v15 = vmul.f32 %v1447_v13, %v346_v14 }
  0xb0   : > { %v1450_v16 = vsub.f32 %v344_v0, %v354_v15  ;;  %v973_v0 = vld [vmem:[#allocation8 + $0x30] sm:$0xff] }
  0xb1   : > { %664 = vmatpush.bf16.msra.mxu2 %v973_v0 }
  0xb2   : > { %v356_v17 = vmul.f32 %v1450_v16, %v1450_v16 }
  0xb4   : > { %357 = vadd.xlane.f32.xlu0 %v356_v17  ;;  %v972_v17 = vld [vmem:[#allocation8 + $0x28] sm:$0xff] }
  0xb5   : > { %665 = vmatpush.bf16.msra.mxu2 %v972_v17 }
  0xb9   : > { %666 = vmatpush.bf16.msra.mxu2 %v971_v19 }
  0xbd   : > { %667 = vmatpush.bf16.msra.mxu2 %v970_v21 }
 0x127   : > { %v358_v62 = vpop.xlane.xlu0 %357 }
 0x128   : > { %v359_v63 = vmul.f32 %v358_v62, %v1447_v13 }
 0x12a   : > { %v360_v2 = vadd.f32 1e-05, %v359_v63 }
 0x12c   : > { %1070 = vrsqrt.f32 %v360_v2  ;;  %vm367_vm2 = vweird.f32 %v360_v2 }
 0x132   : > { %v1071_v3 = vpop.eup %1070 }
 0x133   : > { %v362_v4 = vmul.f32 %v1071_v3, %v360_v2  ;;  %vm368_vm1 = vweird.f32 %v1071_v3 }
 0x134   : > { %vm369_vm3 = vmor %vm367_vm2, %vm368_vm1 }
 0x135   : > { %v363_v5 = vmul.f32 %v1071_v3, %v362_v4 }
 0x137   : > { %v364_v6 = vmul.f32 0.5, %v363_v5 }
 0x139   : > { %v365_v7 = vsub.f32 1.5, %v364_v6 }
 0x13b   : > { %v366_v8 = vmul.f32 %v1071_v3, %v365_v7 }
 0x13d   : > { %v370_v10 = vsel %vm369_vm3, %v1071_v3, %v366_v8 }
 0x13e   : > { %v371_v11 = vmul.f32 %v370_v10, %v1450_v16  ;;  %v969_v16 = vld [vmem:[#allocation8 + $0x10] sm:$0xff] }
 0x13f   : > { %668 = vmatpush.bf16.msra.mxu2 %v969_v16 }
 0x140   : > { %v376_v13 = vmul.f32 %v1065_v9, %v371_v11 }
 0x142   : > { %v381_v14 = vadd.f32 %v1066_v12, %v376_v13 }
 0x143   : > { %669 = vmatpush.bf16.msra.mxu2 %v968_v24 }
 0x144   : > { %v382_v15 = vpack.c.bf16 %v381_v14, %v381_v14 }
 0x146   : > { %493 = vmatmul.bf16.vlgmr.msra.gmra.mxu0 %v382_v15  ;;  %506 = vmatmul.bf16.vlgmr.msra.gmra.mxu1 %v382_v15 }
 0x147   : > { %670 = vmatpush.bf16.msra.mxu2 %v967_v26 }
 0x1c3   : > { %v494_v31 = vpop.f32.mrf.mxu0  ;;  %v507_v32 = vpop.f32.mrf.mxu1 }
 0x1c4   : > { %v495_v33 = vadd.f32 %v494_v31, %v401_v29  ;;  %v508_v34 = vadd.f32 %v507_v32, %v402_v30 }
 0x1c6   : > { %v513_v35 = vmul.f32 0.044715, %v495_v33  ;;  %v514_v36 = vmul.f32 0.044715, %v508_v34  ;;  %v511_v49 = vmul.f32 0.5, %v495_v33  ;;  %v512_v51 = vmul.f32 0.5, %v508_v34 }
 0x1c8   : > { %v515_v37 = vmul.f32 %v513_v35, %v495_v33  ;;  %v516_v38 = vmul.f32 %v514_v36, %v508_v34 }
 0x1ca   : > { %v517_v39 = vmul.f32 %v515_v37, %v495_v33  ;;  %v518_v40 = vmul.f32 %v516_v38, %v508_v34 }
 0x1cb   : > { %v496_v41 = vpop.f32.mrf.mxu0  ;;  %v509_v42 = vpop.f32.mrf.mxu1 }
 0x1cc   : > { %v519_v43 = vadd.f32 %v517_v39, %v495_v33  ;;  %v520_v44 = vadd.f32 %v518_v40, %v508_v34 }
 0x1ce   : > { %v521_v45 = vmul.f32 0.7978846, %v519_v43  ;;  %v522_v46 = vmul.f32 0.7978846, %v520_v44 }
 0x1d0   : > { %1072 = vtanh.f32 %v521_v45 }
 0x1d1   : > { %1074 = vtanh.f32 %v522_v46 }
 0x1d6   : > { %v1073_v47 = vpop.eup %1072 }
 0x1d7   : > { %v1075_v48 = vpop.eup %1074  ;;  %v525_v50 = vadd.f32 1.0, %v1073_v47 }
 0x1d8   : > { %v526_v52 = vadd.f32 1.0, %v1075_v48 }
 0x1d9   : > { %v527_v53 = vmul.f32 %v525_v50, %v511_v49 }
 0x1da   : > { %v528_v54 = vmul.f32 %v526_v52, %v512_v51 }
 0x1db   : > { %v529_v55 = vpack.c.bf16 %v527_v53, %v527_v53 }
 0x1dc   : > { %v530_v56 = vpack.c.bf16 %v528_v54, %v528_v54 }
 0x1dd   : > { %671 = vmatmul.bf16.vlgmr.msra.gmra.mxu2 %v529_v55 }
 0x1de   : > { %684 = vmatmul.bf16.vlgmr.msra.gmra.mxu3 %v530_v56 }
 0x260   : > { %v672_v58 = vpop.f32.mrf.mxu2 }
 0x261   : > { %v673_v59 = vadd.f32 %v1067_v57, %v672_v58  ;;  %v685_v60 = vpop.f32.mrf.mxu3 }
 0x263   : > { %v686_v61 = vadd.f32 %v685_v60, %v673_v59 }
 0x265   : > { %689 = vst [vmem:[%s343_s9] sm:$0xff] %v686_v61 }
 0x266   : > { %1223 = shalt.err (!%p1220_p11)
}
 0x267   : > { %997 = dma.vmem_to_hbm [thread:$0]  (%p1402_p3), %s704_s22, 128, %s706_s1, %s691_s28  }
 0x268   : > { %v674_v62 = vpop.f32.mrf.mxu2 }
 0x269   : > { %v687_v63 = vpop.f32.mrf.mxu3 }
 0x26a PF: > { %s717_s21 = sand.u32 1, %s1258_s24   ;;  %p1516_p12 = scmp.ge.s32.totalorder %s1270_s27, 2 }
 0x26b   : > { %s718_s17 = scalar_lea.sflag [#allocation4], %s717_s21 }
 0x26c   : > { %p1014_p13 = pnand %p1516_p12, %p1355_p6 }
 0x26e   : > { %p1015_p0 = pneg %p1014_p13 }
 0x270   : > { %1253 = dma.done.wait (%p1015_p0), %s718_s17, 128  }
 0x271   : > { %1255 = vsyncadd (%p1015_p0), %s718_s17, 4294967168  ;;  %p22_p3 = scmp.ge.s32.totalorder %s1389_s15, 4   ;;  %s1517_s24 = smov %s1262_s25 }
 0x272   : > { %s1518_s25 = smov %s1266_s26  ;;  %s1519_s26 = smov %s1398_s19 }
 0x273   : > { %s1520_s27 = smov %s1389_s15  ;;  %24 = sbr.rel (!%p22_p3) target bundleno = 9 (0x9), region = 105 }
 0x278   :  { %724 = vsyncpa [#allocation3], 1 }
 0x279   :  { %726 = vsyncpa [#allocation3 + $0x1], 1 }
 0x27a   :  { %727 = vsyncpa [#allocation6], 1 }
 0x27b   :  { %728 = vsyncpa [#allocation9], 1 }
 0x27c   :  { %729 = vsyncpa [#allocation4], 1 }
 0x27d   :  { %731 = vsyncpa [#allocation4 + $0x1], 1 }

</bundles_post_ra>
